<compile_context>
chip_gen: v5e
topology: v5e:2x2
jax: 0.10.0
libtpu: 0.0.40
codegen_flags: <defaults>
</compile_context>

<pallas_src>
import functools

import jax
import jax.numpy as jnp
from jax.experimental import pallas as pl
from jax.experimental.pallas import tpu as pltpu

IN_FEATURES = 10
HIDDEN = 100


def _round_up(n, m):
    return ((n + m - 1) // m) * m


def mlp_kernel(x_ref, w1t_ref, bw_ref, b2_ref, o_ref):
    # x_ref  : (TB, K)  f32  -- natural row-major batch tile (no wrapper transpose)
    # w1t_ref: (HP, K)  f32  -- W1^T, hidden zero-padded 100 -> HP=128 (resident)
    # bw_ref : (HP, 2)  f32  -- column 0: b1, column 1: w2 (zero-padded rows)
    # b2_ref : (1, 1)   f32  -- SMEM scalar
    # o_ref  : (1, TB)  f32  -- lane-dense transposed output (batch on lanes)
    #
    # First layer on the MXU: contract over K on BOTH operands, so the result is
    # (HP, TB) with the batch on the lane axis -- no transpose of x anywhere.
    hT = jax.lax.dot_general(
        w1t_ref[...], x_ref[...],
        dimension_numbers=(((1,), (1,)), ((), ())),
        preferred_element_type=jnp.float32)                      # (HP, TB)  MXU
    hT = jnp.maximum(hT + bw_ref[:, 0:1], 0.0)                   # bias + ReLU, VPU
    # Second layer as VPU multiply + cross-sublane reduce (avoids an N=1 MXU
    # matmul and keeps the output lane-dense).
    yT = jnp.sum(hT * bw_ref[:, 1:2], axis=0, keepdims=True)     # (1, TB)
    o_ref[...] = (yT + b2_ref[0, 0]).astype(o_ref.dtype)


def prepare_params(w1, b1, w2, b2):
    """One-time parameter prep (hoisted out of the forward path).

    Returns (w1t, bw, b2s):
      w1t : (HP, K) f32  -- W1^T with hidden zero-padded to HP=128 (exact)
      bw  : (HP, 2) f32  -- [:, 0] = b1, [:, 1] = w2 (zero-padded rows)
      b2s : (1, 1)  f32  -- scalar for SMEM
    """
    K, H = w1.shape
    HP = _round_up(H, 128)
    w1t = jnp.zeros((HP, K), jnp.float32).at[:H, :].set(w1.T.astype(jnp.float32))
    bw = jnp.zeros((HP, 2), jnp.float32)
    bw = bw.at[:H, 0].set(b1.reshape(-1).astype(jnp.float32))
    bw = bw.at[:H, 1].set(w2.reshape(-1).astype(jnp.float32))
    b2s = jnp.asarray(b2, jnp.float32).reshape(1, 1)
    return w1t, bw, b2s


@functools.partial(jax.jit, static_argnames=("block_b",))
def simple_model_forward(x, w1t, bw, b2s, *, block_b=8192):
    """y = relu(x @ W1 + b1) @ W2 + b2;  x: (B, 10) f32 -> (B, 1) f32."""
    B, K = x.shape
    HP = w1t.shape[0]

    # Batch tile: lane-aligned and large (amortizes per-grid-step overhead), but
    # capped at ceil(B/2) so the grid keeps >= 2 steps for v7x's two TCs when
    # the batch is big enough.  x itself is NOT padded; Pallas clamps the DMA of
    # a ragged final block and the garbage tail columns are sliced off below.
    block_b = max(128, _round_up(block_b, 128))
    B128 = _round_up(B, 128)
    if B128 > 128:
        TB = min(block_b, _round_up(B128 // 2, 128))
    else:
        TB = 128
    grid_b = pl.cdiv(B, TB)
    Bp = grid_b * TB  # block-aligned output width; tail sliced off at the end

    out = pl.pallas_call(
        mlp_kernel,
        out_shape=jax.ShapeDtypeStruct((1, Bp), jnp.float32),
        grid_spec=pltpu.PrefetchScalarGridSpec(
            num_scalar_prefetch=0,
            grid=(grid_b,),
            in_specs=[
                # x tile in natural layout, double-buffered over the batch axis.
                pl.BlockSpec((TB, K), lambda i: (i, 0)),
                # Grid-invariant resident weights / packed biases.
                pl.BlockSpec((HP, K), lambda i: (0, 0)),
                pl.BlockSpec((HP, 2), lambda i: (0, 0)),
                # b2 as an SMEM scalar (no padded VMEM tile / extra DMA).
                pl.BlockSpec((1, 1), lambda i: (0, 0),
                             memory_space=pltpu.MemorySpace.SMEM),
            ],
            out_specs=pl.BlockSpec((1, TB), lambda i: (0, i)),
        ),
        compiler_params=pltpu.CompilerParams(
            dimension_semantics=("parallel",),
            # Default scoped VMEM (32 MiB) is plenty at TB=8192 (~13 MiB/step);
            # set vmem_limit_bytes explicitly only when sweeping block_b >= 16K.
        ),
    )(x, w1t, bw, b2s)

    # Lane-dense (1, Bp) -> PyTorch output layout (B, 1).  Consumers that can
    # accept the flat (B,) / (1, B) layout may take out[0, :B] directly and skip
    # this reshape.
    return out[0, :B].reshape(B, 1)


def init_params(key):
    # nn.Linear shapes:
    #   fc1: weight (100, 10), bias (100,) -> stored transposed as (10, 100)
    #   fc2: weight (1, 100),  bias (1,)   -> stored transposed as (100, 1)
    k1, k2, k3, k4 = jax.random.split(key, 4)
    lim1 = 1.0 / jnp.sqrt(10.0)
    lim2 = 1.0 / jnp.sqrt(100.0)
    w1 = jax.random.uniform(k1, (10, 100), jnp.float32, -lim1, lim1)
    b1 = jax.random.uniform(k2, (1, 100), jnp.float32, -lim1, lim1)
    w2 = jax.random.uniform(k3, (100, 1), jnp.float32, -lim2, lim2)
    b2 = jax.random.uniform(k4, (1, 1), jnp.float32, -lim2, lim2)
    return w1, b1, w2, b2


if __name__ == "__main__":
    key = jax.random.PRNGKey(0)
    kx, kp = jax.random.split(key)
    B = 32
    x = jax.random.normal(kx, (B, IN_FEATURES), jnp.float32)
    w1, b1, w2, b2 = init_params(kp)

    # Parameter prep is done once here (init/load time), not per forward call.
    w1t, bw, b2s = prepare_params(w1, b1, w2, b2)

    out = simple_model_forward(x, w1t, bw, b2s)
    jax.block_until_ready(out)

    # Plain-JAX reference.  Tolerance covers MXU matmul precision differences
    # between the kernel and XLA's default-precision reference matmuls.
    ref = jnp.maximum(x @ w1 + b1, 0.0) @ w2 + b2
    assert out.shape == (B, 1)
    assert jnp.allclose(out, ref, atol=2e-2, rtol=2e-2), float(
        jnp.max(jnp.abs(out - ref)))
    print("KERNEL_OK")
</pallas_src>

<mosaic_0001>
module attributes {stable_mosaic.version = 11 : i64} {
  func.func @mlp_kernel(%arg0: i32, %arg1: memref<128x10xf32, #tpu.memory_space<vmem>>, %arg2: memref<128x10xf32, #tpu.memory_space<vmem>>, %arg3: memref<128x2xf32, #tpu.memory_space<vmem>>, %arg4: memref<1x1xf32, #tpu.memory_space<smem>>, %arg5: memref<1x128xf32, #tpu.memory_space<vmem>>) attributes {dimension_semantics = [#tpu.dimension_semantics<parallel>], iteration_bounds = array<i64: 1>, scalar_prefetch = 0 : i64, scratch_operands = 0 : i64, tpu.core_type = #tpu.core_type<tc>, window_params = [{transform_indices = @transform_0, window_bounds = array<i64: 128, 10>}, {pipeline_mode = #tpu.pipeline_mode<synchronous>, transform_indices = @transform_1, window_bounds = array<i64: 128, 10>}, {pipeline_mode = #tpu.pipeline_mode<synchronous>, transform_indices = @transform_2, window_bounds = array<i64: 128, 2>}, {transform_indices = @transform_3, window_bounds = array<i64: 1, 1>}, {transform_indices = @transform_4, window_bounds = array<i64: 1, 128>}]} {
    %c0 = arith.constant 0 : index
    %c0_0 = arith.constant 0 : index
    %0 = vector.load %arg2[%c0, %c0_0] : memref<128x10xf32, #tpu.memory_space<vmem>>, vector<128x10xf32>
    %c0_1 = arith.constant 0 : index
    %c0_2 = arith.constant 0 : index
    %1 = vector.load %arg1[%c0_1, %c0_2] : memref<128x10xf32, #tpu.memory_space<vmem>>, vector<128x10xf32>
    %cst = arith.constant dense<0.000000e+00> : vector<128x128xf32>
    %2 = tpu.matmul %0, %1, %cst {dimension_numbers = #tpu.dot_dimension_numbers<[1], [1], [0], [0], [0, 0, 1, 0], [], []>} : vector<128x10xf32>, vector<128x10xf32>, vector<128x128xf32> -> vector<128x128xf32>
    %c0_3 = arith.constant 0 : index
    %c0_4 = arith.constant 0 : index
    %3 = vector.load %arg3[%c0_3, %c0_4] : memref<128x2xf32, #tpu.memory_space<vmem>>, vector<128x1xf32>
    %4 = vector.broadcast %3 : vector<128x1xf32> to vector<128x128xf32>
    %5 = arith.addf %2, %4 : vector<128x128xf32>
    %cst_5 = arith.constant 0.000000e+00 : f32
    %6 = vector.broadcast %cst_5 : f32 to vector<128x128xf32>
    %7 = arith.maximumf %5, %6 : vector<128x128xf32>
    %c0_6 = arith.constant 0 : index
    %c1 = arith.constant 1 : index
    %8 = vector.load %arg3[%c0_6, %c1] : memref<128x2xf32, #tpu.memory_space<vmem>>, vector<128x1xf32>
    %9 = vector.broadcast %8 : vector<128x1xf32> to vector<128x128xf32>
    %10 = arith.mulf %7, %9 : vector<128x128xf32>
    %cst_7 = arith.constant dense<0.000000e+00> : vector<128xf32>
    %11 = vector.multi_reduction <add>, %10, %cst_7 [0] : vector<128x128xf32> to vector<128xf32>
    %12 = vector.shape_cast %11 : vector<128xf32> to vector<1x128xf32>
    %c0_8 = arith.constant 0 : index
    %c0_9 = arith.constant 0 : index
    %13 = memref.load %arg4[%c0_8, %c0_9] : memref<1x1xf32, #tpu.memory_space<smem>>
    %14 = vector.broadcast %13 : f32 to vector<1x128xf32>
    %15 = arith.addf %12, %14 : vector<1x128xf32>
    %c0_10 = arith.constant 0 : index
    %c0_11 = arith.constant 0 : index
    %16 = vector.load %arg5[%c0_10, %c0_11] : memref<1x128xf32, #tpu.memory_space<vmem>>, vector<1x128xf32>
    tpu.vector_store %arg5[%c0_10, %c0_11], %15 {strides = array<i32>} : memref<1x128xf32, #tpu.memory_space<vmem>>, vector<1x128xf32>,
    return
  }
  func.func @transform_0(%arg0: i32) -> (i32, i32) {
    %c0_i32 = arith.constant 0 : i32
    %c0_i32_0 = arith.constant 0 : i32
    return %arg0, %c0_i32 : i32, i32
  }
  func.func @transform_1(%arg0: i32) -> (i32, i32) {
    %c0_i32 = arith.constant 0 : i32
    %c0_i32_0 = arith.constant 0 : i32
    %c0_i32_1 = arith.constant 0 : i32
    return %c0_i32, %c0_i32_0 : i32, i32
  }
  func.func @transform_2(%arg0: i32) -> (i32, i32) {
    %c0_i32 = arith.constant 0 : i32
    %c0_i32_0 = arith.constant 0 : i32
    %c0_i32_1 = arith.constant 0 : i32
    return %c0_i32, %c0_i32_0 : i32, i32
  }
  func.func @transform_3(%arg0: i32) -> (i32, i32) {
    %c0_i32 = arith.constant 0 : i32
    %c0_i32_0 = arith.constant 0 : i32
    %c0_i32_1 = arith.constant 0 : i32
    return %c0_i32, %c0_i32_0 : i32, i32
  }
  func.func @transform_4(%arg0: i32) -> (i32, i32) {
    %c0_i32 = arith.constant 0 : i32
    %c0_i32_0 = arith.constant 0 : i32
    return %c0_i32, %arg0 : i32, i32
  }
}

</mosaic_0001>

<bundles_post_ra>
// kernel: simple_model_forward.1
= control target key start
LH: loop header
LB: loop body
LE: loop exit
PB: predicated region body
PF: predicated region fallthrough
CT: control target
= control target key end

     0   :  { %vm146_vm0 = vcmask 80896   ;;  %v521_v1 = vmov 0   ;;  %v522_v29 = vmov 1   ;;  %s857_s0 = inlined_call_operand.vmem [shape: f32[32,10], index: 0, kind: input, shape index: {}]   ;;  %s858_s2 = inlined_call_operand.vmem [shape: f32[128,2], index: 2, kind: input, shape index: {}]   ;;  %s859_s1 = inlined_call_operand.vmem [shape: f32[128,10], index: 1, kind: input, shape index: {}]   ;;  %s860_s3 = inlined_call_operand.<no memory space> [shape: f32[1,1], index: 3, kind: input, shape index: {}]   ;;  %s861_s4 = inlined_call_operand.vmem [shape: f32[1,128], index: 4, kind: output, shape index: {}]  }
   0x1   :  { %v49_v0 = vld [vmem:[%s857_s0 + $0x78] sm:$0xff]  ;;  %516 = vset.pattern.permute.xlu1 %v521_v1  ;;  %v554_v2 = vld [vmem:[%s858_s2 + $0x10] sm:$0xff]  ;;  %515 = vset.pattern.permute.xlu0 %v521_v1  ;;  %v561_v3 = vld [vmem:[%s858_s2] sm:$0xff] }
   0x2   :  { %433 = vmatpush.xpose.msk.msra.mxu0 %vm146_vm0, %v49_v0  ;;  %465 = vmatpush.xpose.msk.msra.mxu1 %vm146_vm0, %v49_v0  ;;  %v48_v4 = vld [vmem:[%s857_s0 + $0x70] sm:$0xff]  ;;  %v575_v5 = vld [vmem:[%s858_s2 + $0x20] sm:$0xff]  ;;  %v47_v6 = vld [vmem:[%s857_s0 + $0x68] sm:$0xff] }
   0x3   :  { %466 = vmatpush.xpose.msk.msra.mxu2 %vm146_vm0, %v49_v0  ;;  %467 = vmatpush.xpose.msk.msra.mxu3 %vm146_vm0, %v49_v0  ;;  %v586_v7 = vld [vmem:[%s858_s2 + $0x18] sm:$0xff]  ;;  %v591_v8 = vld [vmem:[%s858_s2 + $0x8] sm:$0xff]  ;;  %v46_v9 = vld [vmem:[%s857_s0 + $0x60] sm:$0xff] }
   0x4   :  { %78 = vperm.xlu1 %516, %v554_v2   ;;  %68 = vperm.xlu0 %515, %v561_v3   ;;  %v605_v10 = vld [vmem:[%s858_s2 + $0x28] sm:$0xff]  ;;  %v45_v11 = vld [vmem:[%s857_s0 + $0x58] sm:$0xff]  ;;  %v623_v13 = vld [vmem:[%s858_s2 + $0x30] sm:$0xff] }
   0x5   :  { %517 = vset.pattern.permute.xlu2 %v521_v1  ;;  %v618_v12 = vld [vmem:[%s858_s2 + $0x38] sm:$0xff]  ;;  %v44_v14 = vld [vmem:[%s857_s0 + $0x50] sm:$0xff]  ;;  %v637_v15 = vld [vmem:[%s858_s2 + $0x40] sm:$0xff] }
   0x6   :  { %434 = vmatpush.xpose.msk.msra.mxu0 %vm146_vm0, %v48_v4  ;;  %468 = vmatpush.xpose.msk.msra.mxu1 %vm146_vm0, %v48_v4  ;;  %v43_v16 = vld [vmem:[%s857_s0 + $0x48] sm:$0xff]  ;;  %v650_v17 = vld [vmem:[%s858_s2 + $0x50] sm:$0xff]  ;;  %v42_v19 = vld [vmem:[%s857_s0 + $0x40] sm:$0xff] }
   0x7   :  { %469 = vmatpush.xpose.msk.msra.mxu2 %vm146_vm0, %v48_v4  ;;  %470 = vmatpush.xpose.msk.msra.mxu3 %vm146_vm0, %v48_v4  ;;  %v655_v18 = vld [vmem:[%s858_s2 + $0x48] sm:$0xff]  ;;  %v669_v20 = vld [vmem:[%s858_s2 + $0x58] sm:$0xff]  ;;  %v687_v23 = vld [vmem:[%s858_s2 + $0x60] sm:$0xff] }
   0x8   :  { %88 = vperm.xlu2 %517, %v575_v5   ;;  %v41_v21 = vld [vmem:[%s857_s0 + $0x38] sm:$0xff]  ;;  %v682_v22 = vld [vmem:[%s858_s2 + $0x68] sm:$0xff]  ;;  %v40_v24 = vld [vmem:[%s857_s0 + $0x30] sm:$0xff] }
   0x9   :  { %v701_v25 = vld [vmem:[%s858_s2 + $0x70] sm:$0xff]  ;;  %v39_v26 = vld [vmem:[%s857_s0 + $0x28] sm:$0xff]  ;;  %v714_v27 = vld [vmem:[%s858_s2 + $0x78] sm:$0xff] }
   0xa   :  { %435 = vmatpush.xpose.msk.msra.mxu0 %vm146_vm0, %v47_v6  ;;  %471 = vmatpush.xpose.msk.msra.mxu1 %vm146_vm0, %v47_v6  ;;  %v38_v28 = vld [vmem:[%s857_s0 + $0x20] sm:$0xff]  ;;  %v37_v30 = vld [vmem:[%s857_s0 + $0x18] sm:$0xff]  ;;  %v36_v31 = vld [vmem:[%s857_s0 + $0x10] sm:$0xff] }
   0xb   :  { %472 = vmatpush.xpose.msk.msra.mxu2 %vm146_vm0, %v47_v6  ;;  %473 = vmatpush.xpose.msk.msra.mxu3 %vm146_vm0, %v47_v6  ;;  %v35_v32 = vld [vmem:[%s857_s0 + $0x8] sm:$0xff]  ;;  %v34_v33 = vld [vmem:[%s857_s0] sm:$0xff]  ;;  %v20_v42 = vld [vmem:[%s859_s1 + $0x10] sm:$0xff] }
   0xc   :  { %83 = vperm.xlu1 %516, %v586_v7   ;;  %73 = vperm.xlu0 %515, %v591_v8   ;;  %v18_v34 = vld [vmem:[%s859_s1] sm:$0xff]  ;;  %v19_v38 = vld [vmem:[%s859_s1 + $0x8] sm:$0xff]  ;;  %v24_v43 = vld [vmem:[%s859_s1 + $0x30] sm:$0xff] }
   0xd   :  { %v22_v35 = vld [vmem:[%s859_s1 + $0x20] sm:$0xff]  ;;  %v23_v39 = vld [vmem:[%s859_s1 + $0x28] sm:$0xff]  ;;  %v28_v44 = vld [vmem:[%s859_s1 + $0x50] sm:$0xff] }
   0xe   :  { %436 = vmatpush.xpose.msk.msra.mxu0 %vm146_vm0, %v46_v9  ;;  %474 = vmatpush.xpose.msk.msra.mxu1 %vm146_vm0, %v46_v9  ;;  %v26_v36 = vld [vmem:[%s859_s1 + $0x40] sm:$0xff]  ;;  %v27_v40 = vld [vmem:[%s859_s1 + $0x48] sm:$0xff]  ;;  %v32_v45 = vld [vmem:[%s859_s1 + $0x70] sm:$0xff] }
   0xf   :  { %475 = vmatpush.xpose.msk.msra.mxu2 %vm146_vm0, %v46_v9  ;;  %476 = vmatpush.xpose.msk.msra.mxu3 %vm146_vm0, %v46_v9  ;;  %v30_v37 = vld [vmem:[%s859_s1 + $0x60] sm:$0xff]  ;;  %v31_v41 = vld [vmem:[%s859_s1 + $0x68] sm:$0xff]  ;;  %v21_v46 = vld [vmem:[%s859_s1 + $0x18] sm:$0xff] }
  0x10   :  { %93 = vperm.xlu2 %517, %v605_v10   ;;  %v25_v47 = vld [vmem:[%s859_s1 + $0x38] sm:$0xff] }
  0x11   :  { %v29_v48 = vld [vmem:[%s859_s1 + $0x58] sm:$0xff] }
  0x12   :  { %437 = vmatpush.xpose.msk.msra.mxu0 %vm146_vm0, %v45_v11  ;;  %477 = vmatpush.xpose.msk.msra.mxu1 %vm146_vm0, %v45_v11  ;;  %v33_v49 = vld [vmem:[%s859_s1 + $0x78] sm:$0xff] }
  0x13   :  { %478 = vmatpush.xpose.msk.msra.mxu2 %vm146_vm0, %v45_v11  ;;  %479 = vmatpush.xpose.msk.msra.mxu3 %vm146_vm0, %v45_v11 }
  0x14   :  { %103 = vperm.xlu1 %516, %v618_v12   ;;  %98 = vperm.xlu0 %515, %v623_v13  }
  0x16   :  { %438 = vmatpush.xpose.msk.msra.mxu0 %vm146_vm0, %v44_v14  ;;  %480 = vmatpush.xpose.msk.msra.mxu1 %vm146_vm0, %v44_v14 }
  0x17   :  { %481 = vmatpush.xpose.msk.msra.mxu2 %vm146_vm0, %v44_v14  ;;  %482 = vmatpush.xpose.msk.msra.mxu3 %vm146_vm0, %v44_v14 }
  0x18   :  { %108 = vperm.xlu2 %517, %v637_v15  }
  0x1a   :  { %439 = vmatpush.xpose.msk.msra.mxu0 %vm146_vm0, %v43_v16  ;;  %483 = vmatpush.xpose.msk.msra.mxu1 %vm146_vm0, %v43_v16 }
  0x1b   :  { %484 = vmatpush.xpose.msk.msra.mxu2 %vm146_vm0, %v43_v16  ;;  %485 = vmatpush.xpose.msk.msra.mxu3 %vm146_vm0, %v43_v16 }
  0x1c   :  { %118 = vperm.xlu1 %516, %v650_v17   ;;  %113 = vperm.xlu0 %515, %v655_v18  }
  0x1e   :  { %440 = vmatpush.xpose.msk.msra.mxu0 %vm146_vm0, %v42_v19  ;;  %486 = vmatpush.xpose.msk.msra.mxu1 %vm146_vm0, %v42_v19 }
  0x1f   :  { %487 = vmatpush.xpose.msk.msra.mxu2 %vm146_vm0, %v42_v19  ;;  %488 = vmatpush.xpose.msk.msra.mxu3 %vm146_vm0, %v42_v19 }
  0x20   :  { %123 = vperm.xlu2 %517, %v669_v20  }
  0x22   :  { %441 = vmatpush.xpose.msk.msra.mxu0 %vm146_vm0, %v41_v21  ;;  %489 = vmatpush.xpose.msk.msra.mxu1 %vm146_vm0, %v41_v21 }
  0x23   :  { %490 = vmatpush.xpose.msk.msra.mxu2 %vm146_vm0, %v41_v21  ;;  %491 = vmatpush.xpose.msk.msra.mxu3 %vm146_vm0, %v41_v21 }
  0x24   :  { %133 = vperm.xlu1 %516, %v682_v22   ;;  %128 = vperm.xlu0 %515, %v687_v23  }
  0x26   :  { %442 = vmatpush.xpose.msk.msra.mxu0 %vm146_vm0, %v40_v24  ;;  %492 = vmatpush.xpose.msk.msra.mxu1 %vm146_vm0, %v40_v24 }
  0x27   :  { %493 = vmatpush.xpose.msk.msra.mxu2 %vm146_vm0, %v40_v24  ;;  %494 = vmatpush.xpose.msk.msra.mxu3 %vm146_vm0, %v40_v24 }
  0x28   :  { %138 = vperm.xlu2 %517, %v701_v25  }
  0x2a   :  { %443 = vmatpush.xpose.msk.msra.mxu0 %vm146_vm0, %v39_v26  ;;  %495 = vmatpush.xpose.msk.msra.mxu1 %vm146_vm0, %v39_v26 }
  0x2b   :  { %496 = vmatpush.xpose.msk.msra.mxu2 %vm146_vm0, %v39_v26  ;;  %497 = vmatpush.xpose.msk.msra.mxu3 %vm146_vm0, %v39_v26 }
  0x2c   :  { %518 = vset.pattern.permute.xlu1 %v522_v29  ;;  %143 = vperm.xlu0 %515, %v714_v27  }
  0x2d   :  { %325 = vperm.xlu1 %518, %v561_v3  }
  0x2e   :  { %444 = vmatpush.xpose.msk.msra.mxu0 %vm146_vm0, %v38_v28  ;;  %498 = vmatpush.xpose.msk.msra.mxu1 %vm146_vm0, %v38_v28 }
  0x2f   :  { %499 = vmatpush.xpose.msk.msra.mxu2 %vm146_vm0, %v38_v28  ;;  %500 = vmatpush.xpose.msk.msra.mxu3 %vm146_vm0, %v38_v28 }
  0x30   :  { %519 = vset.pattern.permute.xlu2 %v522_v29 }
  0x31   :  { %329 = vperm.xlu2 %519, %v591_v8  }
  0x32   :  { %445 = vmatpush.xpose.msk.msra.mxu0 %vm146_vm0, %v37_v30  ;;  %501 = vmatpush.xpose.msk.msra.mxu1 %vm146_vm0, %v37_v30 }
  0x33   :  { %502 = vmatpush.xpose.msk.msra.mxu2 %vm146_vm0, %v37_v30  ;;  %503 = vmatpush.xpose.msk.msra.mxu3 %vm146_vm0, %v37_v30 }
  0x34   :  { %520 = vset.pattern.permute.xlu0 %v522_v29 }
  0x35   :  { %337 = vperm.xlu1 %518, %v586_v7   ;;  %333 = vperm.xlu0 %520, %v554_v2  }
  0x36   :  { %446 = vmatpush.xpose.msk.msra.mxu0 %vm146_vm0, %v36_v31  ;;  %504 = vmatpush.xpose.msk.msra.mxu1 %vm146_vm0, %v36_v31 }
  0x37   :  { %505 = vmatpush.xpose.msk.msra.mxu2 %vm146_vm0, %v36_v31  ;;  %506 = vmatpush.xpose.msk.msra.mxu3 %vm146_vm0, %v36_v31 }
  0x39   :  { %341 = vperm.xlu2 %519, %v575_v5  }
  0x3a   :  { %447 = vmatpush.xpose.msk.msra.mxu0 %vm146_vm0, %v35_v32  ;;  %507 = vmatpush.xpose.msk.msra.mxu1 %vm146_vm0, %v35_v32 }
  0x3b   :  { %508 = vmatpush.xpose.msk.msra.mxu2 %vm146_vm0, %v35_v32  ;;  %509 = vmatpush.xpose.msk.msra.mxu3 %vm146_vm0, %v35_v32 }
  0x3d   :  { %345 = vperm.xlu1 %518, %v605_v10   ;;  %353 = vperm.xlu0 %520, %v618_v12  }
  0x3e   :  { %448 = vmatpush.xpose.msk.msra.mxu0 %vm146_vm0, %v34_v33  ;;  %510 = vmatpush.xpose.msk.msra.mxu1 %vm146_vm0, %v34_v33 }
  0x3f   :  { %511 = vmatpush.xpose.msk.msra.mxu2 %vm146_vm0, %v34_v33  ;;  %512 = vmatpush.xpose.msk.msra.mxu3 %vm146_vm0, %v34_v33 }
  0x41   :  { %449 = vmatmul.msk.f32.vlgmr.msra.gmra.mxu0 %vm146_vm0, %v18_v34  ;;  %453 = vmatmul.msk.f32.vlgmr.msra.gmra.mxu1 %vm146_vm0, %v22_v35 }
  0x42   :  { %457 = vmatmul.msk.f32.vlgmr.msra.gmra.mxu2 %vm146_vm0, %v26_v36  ;;  %461 = vmatmul.msk.f32.vlgmr.msra.gmra.mxu3 %vm146_vm0, %v30_v37 }
  0x43   :  { %349 = vperm.xlu2 %519, %v623_v13  }
  0x45   :  { %357 = vperm.xlu1 %518, %v637_v15   ;;  %365 = vperm.xlu0 %520, %v650_v17  }
  0x49   :  { %450 = vmatmul.msk.f32.gmra.mxu0 %vm146_vm0, %v19_v38  ;;  %454 = vmatmul.msk.f32.gmra.mxu1 %vm146_vm0, %v23_v39 }
  0x4a   :  { %458 = vmatmul.msk.f32.gmra.mxu2 %vm146_vm0, %v27_v40  ;;  %462 = vmatmul.msk.f32.gmra.mxu3 %vm146_vm0, %v31_v41 }
  0x4b   :  { %361 = vperm.xlu2 %519, %v655_v18  }
  0x4d   :  { %369 = vperm.xlu1 %518, %v669_v20   ;;  %377 = vperm.xlu0 %520, %v682_v22  }
  0x51   :  { %451 = vmatmul.msk.f32.gmra.mxu0 %vm146_vm0, %v20_v42  ;;  %455 = vmatmul.msk.f32.gmra.mxu1 %vm146_vm0, %v24_v43 }
  0x52   :  { %459 = vmatmul.msk.f32.gmra.mxu2 %vm146_vm0, %v28_v44  ;;  %463 = vmatmul.msk.f32.gmra.mxu3 %vm146_vm0, %v32_v45 }
  0x53   :  { %373 = vperm.xlu2 %519, %v687_v23  }
  0x55   :  { %381 = vperm.xlu1 %518, %v701_v25  }
  0x59   :  { %452 = vmatmul.msk.f32.gmra.mxu0 %vm146_vm0, %v21_v46  ;;  %456 = vmatmul.msk.f32.gmra.mxu1 %vm146_vm0, %v25_v47 }
  0x5a   :  { %460 = vmatmul.msk.f32.gmra.mxu2 %vm146_vm0, %v29_v48  ;;  %464 = vmatmul.msk.f32.gmra.mxu3 %vm146_vm0, %v33_v49 }
  0x5b   :  { %385 = vperm.xlu2 %519, %v714_v27  }
  0x62   :  { %v89_v51 = vpop.permute.xlu2 %88 }
  0x6a   :  { %v94_v54 = vpop.permute.xlu2 %93 }
  0x72   :  { %v109_v57 = vpop.permute.xlu2 %108 }
  0x76   :  { %v79_v50 = vpop.permute.xlu1 %78  ;;  %v69_v52 = vpop.permute.xlu0 %68 }
  0x7a   :  { %v836_v60 = vpop.permute.xlu2 %123 }
  0x7e   :  { %v84_v53 = vpop.permute.xlu1 %83  ;;  %v74_v55 = vpop.permute.xlu0 %73 }
  0x82   :  { %v840_v63 = vpop.permute.xlu2 %138 }
  0x86   :  { %v104_v56 = vpop.permute.xlu1 %103  ;;  %v99_v58 = vpop.permute.xlu0 %98 }
  0x8b   :  { %v330_v4 = vpop.permute.xlu2 %329 }
  0x8e   :  { %v119_v59 = vpop.permute.xlu1 %118  ;;  %v114_v61 = vpop.permute.xlu0 %113 }
  0x93   :  { %v342_v10 = vpop.permute.xlu2 %341 }
  0x96   :  { %v838_v62 = vpop.permute.xlu1 %133  ;;  %v842_v0 = vpop.permute.xlu0 %128 }
  0x9d   :  { %v350_v23 = vpop.permute.xlu2 %349 }
  0x9e   :  { %v844_v5 = vpop.permute.xlu0 %143 }
  0x9f   :  { %v326_v1 = vpop.permute.xlu1 %325 }
  0xa5   :  { %v362_v48 = vpop.permute.xlu2 %361 }
  0xa7   :  { %v338_v9 = vpop.permute.xlu1 %337  ;;  %v334_v12 = vpop.permute.xlu0 %333 }
  0xaf   :  { %v346_v20 = vpop.permute.xlu1 %345  ;;  %v354_v33 = vpop.permute.xlu0 %353 }
  0xb7   :  { %v358_v43 = vpop.permute.xlu1 %357 }
  0xbe   :  { %v260_v2 = vpop.f32.mrf.mxu0  ;;  %v272_v3 = vpop.f32.mrf.mxu1 }
  0xbf   :  { %v261_v17 = vadd.f32 %v260_v2, %v69_v52  ;;  %v273_v25 = vadd.f32 %v272_v3, %v89_v51  ;;  %v366_v3 = vpop.permute.xlu0 %365 }
  0xc1   :  { %v308_v21 = vmax.f32 %v261_v17, 0.0  ;;  %v312_v35 = vmax.f32 %v273_v25, 0.0 }
  0xc3   :  { %v388_v29 = vmul.f32 %v326_v1, %v308_v21  ;;  %v392_v44 = vmul.f32 %v342_v10, %v312_v35 }
  0xc5   :  { %v284_v6 = vpop.f32.mrf.mxu2  ;;  %v296_v11 = vpop.f32.mrf.mxu3 }
  0xc6   :  { %v263_v7 = vpop.f32.mrf.mxu0  ;;  %v275_v8 = vpop.f32.mrf.mxu1  ;;  %v285_v45 = vadd.f32 %v284_v6, %v109_v57  ;;  %v297_v6 = vadd.f32 %v296_v11, %v842_v0 }
  0xc7   :  { %v264_v13 = vadd.f32 %v263_v7, %v74_v55  ;;  %v276_v30 = vadd.f32 %v275_v8, %v94_v54  ;;  %v378_v11 = vpop.permute.xlu0 %377 }
  0xc8   :  { %v316_v55 = vmax.f32 %v285_v45, 0.0  ;;  %v320_v17 = vmax.f32 %v297_v6, 0.0 }
  0xc9   :  { %v309_v19 = vmax.f32 %v264_v13, 0.0  ;;  %v313_v39 = vmax.f32 %v276_v30, 0.0 }
  0xca   :  { %v396_v57 = vmul.f32 %v358_v43, %v316_v55 }
  0xcb   :  { %v389_v26 = vmul.f32 %v330_v4, %v309_v19 }
  0xcd   :  { %v287_v14 = vpop.f32.mrf.mxu2  ;;  %v299_v24 = vpop.f32.mrf.mxu3  ;;  %v404_v36 = vadd.f32 %v389_v26, %v388_v29 }
  0xce   :  { %v266_v15 = vpop.f32.mrf.mxu0  ;;  %v278_v16 = vpop.f32.mrf.mxu1  ;;  %v288_v51 = vadd.f32 %v287_v14, %v114_v61  ;;  %v300_v13 = vadd.f32 %v299_v24, %v838_v62 }
  0xcf   :  { %v267_v18 = vadd.f32 %v266_v15, %v79_v50  ;;  %v279_v37 = vadd.f32 %v278_v16, %v99_v58  ;;  %v393_v50 = vmul.f32 %v346_v20, %v313_v39  ;;  %v374_v16 = vpop.permute.xlu2 %373 }
  0xd0   :  { %v317_v4 = vmax.f32 %v288_v51, 0.0  ;;  %v321_v21 = vmax.f32 %v300_v13, 0.0 }
  0xd1   :  { %v310_v22 = vmax.f32 %v267_v18, 0.0  ;;  %v314_v46 = vmax.f32 %v279_v37, 0.0 }
  0xd2   :  { %v397_v61 = vmul.f32 %v362_v48, %v317_v4 }
  0xd3   :  { %v390_v31 = vmul.f32 %v334_v12, %v310_v22  ;;  %v394_v1 = vmul.f32 %v350_v23, %v314_v46  ;;  %v370_v12 = vpop.permute.xlu1 %369  ;;  %v400_v23 = vmul.f32 %v374_v16, %v320_v17 }
  0xd5   :  { %v290_v27 = vpop.f32.mrf.mxu2  ;;  %v405_v40 = vadd.f32 %v404_v36, %v390_v31  ;;  %v302_v49 = vpop.f32.mrf.mxu3 }
  0xd6   :  { %v269_v28 = vpop.f32.mrf.mxu0  ;;  %v281_v34 = vpop.f32.mrf.mxu1  ;;  %v291_v58 = vadd.f32 %v290_v27, %v119_v59  ;;  %v303_v19 = vadd.f32 %v302_v49, %v840_v63  ;;  %v401_v27 = vmul.f32 %v378_v11, %v321_v21 }
  0xd7   :  { %v270_v32 = vadd.f32 %v269_v28, %v84_v53  ;;  %v282_v42 = vadd.f32 %v281_v34, %v104_v56  ;;  %v386_v31 = vpop.permute.xlu2 %385 }
  0xd8   :  { %v322_v25 = vmax.f32 %v303_v19, 0.0 }
  0xd9   :  { %v311_v38 = vmax.f32 %v270_v32, 0.0  ;;  %v315_v53 = vmax.f32 %v282_v42, 0.0 }
  0xdb   :  { %v391_v41 = vmul.f32 %v338_v9, %v311_v38  ;;  %v395_v7 = vmul.f32 %v354_v33, %v315_v53  ;;  %v318_v9 = vmax.f32 %v291_v58, 0.0  ;;  %v382_v28 = vpop.permute.xlu1 %381 }
  0xdc   :  { %v402_v29 = vmul.f32 %v382_v28, %v322_v25 }
  0xdd   :  { %v406_v47 = vadd.f32 %v405_v40, %v391_v41  ;;  %v293_v54 = vpop.f32.mrf.mxu2  ;;  %v305_v59 = vpop.f32.mrf.mxu3  ;;  %v398_v18 = vmul.f32 %v366_v3, %v318_v9 }
  0xde   :  { %v294_v8 = vadd.f32 %v293_v54, %v836_v60  ;;  %v306_v0 = vadd.f32 %v305_v59, %v844_v5  ;;  %v426_v5 = vstv %s860_s3 }
  0xdf   :  { %v407_v52 = vadd.f32 %v406_v47, %v392_v44 }
  0xe0   :  { %v319_v15 = vmax.f32 %v294_v8, 0.0  ;;  %v323_v24 = vmax.f32 %v306_v0, 0.0 }
  0xe1   :  { %v408_v2 = vadd.f32 %v407_v52, %v393_v50 }
  0xe2   :  { %v399_v60 = vmul.f32 %v370_v12, %v319_v15  ;;  %v403_v32 = vmul.f32 %v386_v31, %v323_v24 }
  0xe3   :  { %v409_v56 = vadd.f32 %v408_v2, %v394_v1 }
  0xe5   :  { %v410_v10 = vadd.f32 %v409_v56, %v395_v7 }
  0xe7   :  { %v411_v14 = vadd.f32 %v410_v10, %v396_v57 }
  0xe9   :  { %v412_v20 = vadd.f32 %v411_v14, %v397_v61 }
  0xeb   :  { %v413_v22 = vadd.f32 %v412_v20, %v398_v18 }
  0xed   :  { %v414_v26 = vadd.f32 %v413_v22, %v399_v60 }
  0xef   :  { %v415_v62 = vadd.f32 %v414_v26, %v400_v23 }
  0xf1   :  { %v416_v30 = vadd.f32 %v415_v62, %v401_v27 }
  0xf3   :  { %v417_v33 = vadd.f32 %v416_v30, %v402_v29 }
  0xf5   :  { %v418_v63 = vadd.f32 %v417_v33, %v403_v32 }
  0xf7   :  { %v419_v34 = vrot.slane %v418_v63, 4 }
  0xf9   :  { %v420_v35 = vadd.f32 %v419_v34, %v418_v63 }
  0xfb   :  { %v421_v36 = vrot.slane %v420_v35, 2 }
  0xfd   :  { %v422_v37 = vadd.f32 %v421_v36, %v420_v35 }
  0xff   :  { %v423_v38 = vrot.slane %v422_v37, 1 }
 0x101   :  { %v424_v39 = vadd.f32 %v423_v38, %v422_v37 }
 0x103   :  { %v427_v40 = vadd.f32 %v426_v5, %v424_v39 }
 0x105   :  { %428 = vst [vmem:[%s861_s4] sm:$0x1] %v427_v40 }

</bundles_post_ra>
